<compile_context>
chip_gen: v7x
topology: tpu7x:2x2x1
jax: 0.10.0
libtpu: 0.0.40
codegen_flags: <defaults>
</compile_context>

<pallas_src>
import functools

import jax
import jax.numpy as jnp
from jax.experimental import pallas as pl
from jax.experimental.pallas import tpu as pltpu

_LANE = 128  # lane width of a vreg / minimum lane-dense output width


def _round_up(x, m):
    return ((x + m - 1) // m) * m


def _router_kernel(top_k, x_ref, w_ref, b_ref, logits_ref, slab_ref):
    x = x_ref[...]          # (T, H)  native dtype (bf16/f32)
    w = w_ref[...]          # (H, Ep) native dtype
    b = b_ref[...]          # (1, Ep) f32 (padded lanes hold -1e30)

    # --- gate linear: MXU in native dtype, f32 accumulation ---
    logits = jnp.dot(x, w, preferred_element_type=jnp.float32) + b      # (T, Ep)
    logits_ref[...] = logits.astype(logits_ref.dtype)

    n_tok, e_pad = logits.shape
    col_ids = jax.lax.broadcasted_iota(jnp.int32, (n_tok, e_pad), 1)

    # --- iterative top-k directly on logits (k small & static).
    #     Padded lanes carry logit -1e30 so they can never be selected while
    #     top_k <= real expert count.  Smallest-index tie-break matches
    #     lax.top_k / torch.topk ordering for distinct values. ---
    cur = logits
    vals, idxs = [], []
    for _ in range(top_k):
        v = jnp.max(cur, axis=-1, keepdims=True)                         # (T, 1)
        idx = jnp.min(jnp.where(cur == v, col_ids, e_pad),
                      axis=-1, keepdims=True)                            # (T, 1)
        vals.append(v)
        idxs.append(idx)
        cur = jnp.where(col_ids == idx, -jnp.inf, cur)

    # --- renormalized top-k weights: softmax restricted to the selected K.
    #     (The full-softmax denominator cancels after the renormalization, so
    #     no full-width exp / reductions are needed.)  vals[0] is the global
    #     max, so exp arguments are <= 0 and es[0] == 1. ---
    m0 = vals[0]
    es = [jnp.exp(v - m0) for v in vals]                                 # (T, 1) each
    denom = es[0]
    for e in es[1:]:
        denom = denom + e
    weights = [e / denom for e in es]                                    # exact divide

    # --- single lane-dense (T, 128) int32 output slab:
    #     lanes [0, K)   : top-k weights as raw f32 bit patterns
    #     lanes [K, 2K)  : top-k expert indices (int32)
    #     remaining lanes: zero ---
    lane_w = slab_ref.shape[-1]
    lane_ids = jax.lax.broadcasted_iota(jnp.int32, (n_tok, lane_w), 1)
    slab = jnp.zeros((n_tok, lane_w), jnp.int32)
    for k in range(top_k):
        w_bits = pltpu.bitcast(weights[k], jnp.int32)                    # (T, 1)
        slab = jnp.where(lane_ids == k, w_bits, slab)
        slab = jnp.where(lane_ids == (top_k + k), idxs[k], slab)
    slab_ref[...] = slab


def moe_router(hidden_states, gate_w, gate_b, top_k, token_tile=1024):
    """hidden_states: (N, H); gate_w: (H, E); gate_b: (E,)."""
    n_tok, hidden = hidden_states.shape
    n_exp = gate_w.shape[1]
    assert top_k <= n_exp, "top_k must not exceed the expert count"
    assert 2 * top_k <= _LANE, "packed output slab holds at most 64 experts per token"

    e_pad = _round_up(max(n_exp, _LANE), _LANE)

    # Pad the expert dim to a lane-dense width. Padded bias lanes get a huge
    # negative value -> those logits can never win the top-k.
    w_p = jnp.zeros((hidden, e_pad), gate_w.dtype).at[:, :n_exp].set(gate_w)
    b_p = jnp.full((1, e_pad), -1e30, dtype=jnp.float32)
    b_p = b_p.at[:, :n_exp].set(gate_b.astype(jnp.float32))

    # Token tile rounded to the dtype's sublane packing (8 rows f32, 16 bf16,
    # 32 int8) so no packed-layout relayout is needed; bounded by n_tok.
    itemsize = jnp.dtype(hidden_states.dtype).itemsize
    sub = 8 * max(1, 4 // max(1, itemsize))
    tile = min(_round_up(token_tile, sub), _round_up(n_tok, sub))
    n_pad = _round_up(n_tok, tile)
    if n_pad != n_tok:
        x_p = jnp.zeros((n_pad, hidden), hidden_states.dtype).at[:n_tok].set(hidden_states)
    else:
        x_p = hidden_states

    grid = (n_pad // tile,)
    kernel = functools.partial(_router_kernel, top_k)

    # NOTE: for production-size hidden_dim (H >= 8192 bf16 at tile=1024), add a
    # second 'arbitrary' grid axis over H with an f32 VMEM accumulator to keep
    # the double-buffered footprint flat within v7x's 64 MiB VMEM; on v7x one
    # can also deepen the token stream with pipeline_mode=pl.Buffered(3) and
    # single-buffer the constant W/b specs. Unnecessary at these sizes.
    out_shape = (
        # logits in the input dtype (PyTorch: gate output dtype == input dtype)
        jax.ShapeDtypeStruct((n_pad, e_pad), hidden_states.dtype),
        # packed top-k slab: weight bits in lanes [0,K), indices in [K,2K)
        jax.ShapeDtypeStruct((n_pad, _LANE), jnp.int32),
    )

    logits_p, slab = pl.pallas_call(
        kernel,
        out_shape=out_shape,
        grid=grid,
        in_specs=[
            pl.BlockSpec((tile, hidden), lambda i: (i, 0)),   # token stream: pipelined
            pl.BlockSpec((hidden, e_pad), lambda i: (0, 0)),  # W: VMEM-resident
            pl.BlockSpec((1, e_pad), lambda i: (0, 0)),       # b: VMEM-resident
        ],
        out_specs=(
            pl.BlockSpec((tile, e_pad), lambda i: (i, 0)),
            pl.BlockSpec((tile, _LANE), lambda i: (i, 0)),
        ),
        compiler_params=pltpu.CompilerParams(
            dimension_semantics=("parallel",),
            vmem_limit_bytes=48 * 1024 * 1024,
        ),
    )(x_p, w_p, b_p)

    router_logits = logits_p[:n_tok, :n_exp]
    top_k_weights = jax.lax.bitcast_convert_type(
        slab[:n_tok, :top_k], jnp.float32).astype(hidden_states.dtype)
    top_k_idx = slab[:n_tok, top_k:2 * top_k]
    # expert_mask rebuilt in XLA from the kernel's idx output (avoids the
    # (N, K, E) int32 HBM writeback from the kernel).
    expert_mask = jax.nn.one_hot(top_k_idx, n_exp, dtype=jnp.int32)
    return router_logits, top_k_weights, top_k_idx, expert_mask


def _reference(hidden_states, gate_w, gate_b, top_k):
    logits = hidden_states.astype(jnp.float32) @ gate_w + gate_b
    probs = jax.nn.softmax(logits, axis=-1)
    top_v, top_i = jax.lax.top_k(probs, top_k)
    top_v = top_v / jnp.sum(top_v, axis=-1, keepdims=True)
    mask = jax.nn.one_hot(top_i, gate_w.shape[1], dtype=jnp.int32)
    return (logits.astype(hidden_states.dtype),
            top_v.astype(hidden_states.dtype), top_i.astype(jnp.int32), mask)


if __name__ == "__main__":
    # Small shapes consistent with the module: batch=2, seq=8, hidden=32, 8 experts, top_k=2.
    batch, seq, hidden_dim, expert_number, top_k = 2, 8, 32, 8, 2
    n_tokens = batch * seq

    key = jax.random.PRNGKey(0)
    kx, kw, kb = jax.random.split(key, 3)
    hidden_states = jax.random.normal(kx, (n_tokens, hidden_dim), dtype=jnp.float32)
    gate_w = jax.random.normal(kw, (hidden_dim, expert_number), dtype=jnp.float32) * 0.1
    gate_b = jax.random.normal(kb, (expert_number,), dtype=jnp.float32) * 0.01

    outs = moe_router(hidden_states, gate_w, gate_b, top_k)
    outs = jax.block_until_ready(outs)
    logits, weights, idx, mask = outs

    ref_logits, ref_w, ref_i, ref_m = _reference(hidden_states, gate_w, gate_b, top_k)
    assert jnp.allclose(logits, ref_logits, atol=1e-4), "logits mismatch"
    assert jnp.allclose(weights, ref_w, atol=1e-5), "weights mismatch"
    assert jnp.array_equal(idx, ref_i), "indices mismatch"
    assert jnp.array_equal(mask, ref_m), "mask mismatch"

    print("KERNEL_OK")
</pallas_src>

<mosaic_0001>
module attributes {stable_mosaic.version = 11 : i64} {
  func.func @_router_kernel(%arg0: i32, %arg1: memref<16x32xf32, #tpu.memory_space<vmem>>, %arg2: memref<32x128xf32, #tpu.memory_space<vmem>>, %arg3: memref<1x128xf32, #tpu.memory_space<vmem>>, %arg4: memref<16x128xf32, #tpu.memory_space<vmem>>, %arg5: memref<16x128xi32, #tpu.memory_space<vmem>>) attributes {dimension_semantics = [#tpu.dimension_semantics<parallel>], iteration_bounds = array<i64: 1>, scalar_prefetch = 0 : i64, scratch_operands = 0 : i64, tpu.core_type = #tpu.core_type<tc>, window_params = [{transform_indices = @transform_0, window_bounds = array<i64: 16, 32>}, {pipeline_mode = #tpu.pipeline_mode<synchronous>, transform_indices = @transform_1, window_bounds = array<i64: 32, 128>}, {pipeline_mode = #tpu.pipeline_mode<synchronous>, transform_indices = @transform_2, window_bounds = array<i64: 1, 128>}, {transform_indices = @transform_3, window_bounds = array<i64: 16, 128>}, {transform_indices = @transform_4, window_bounds = array<i64: 16, 128>}]} {
    %c0 = arith.constant 0 : index
    %c0_0 = arith.constant 0 : index
    %0 = vector.load %arg1[%c0, %c0_0] : memref<16x32xf32, #tpu.memory_space<vmem>>, vector<16x32xf32>
    %c0_1 = arith.constant 0 : index
    %c0_2 = arith.constant 0 : index
    %1 = vector.load %arg2[%c0_1, %c0_2] : memref<32x128xf32, #tpu.memory_space<vmem>>, vector<32x128xf32>
    %c0_3 = arith.constant 0 : index
    %c0_4 = arith.constant 0 : index
    %2 = vector.load %arg3[%c0_3, %c0_4] : memref<1x128xf32, #tpu.memory_space<vmem>>, vector<1x128xf32>
    %cst = arith.constant dense<0.000000e+00> : vector<16x128xf32>
    %3 = tpu.matmul %0, %1, %cst {dimension_numbers = #tpu.dot_dimension_numbers<[1], [0], [0], [1], [0, 0, 1, 1], [], []>} : vector<16x32xf32>, vector<32x128xf32>, vector<16x128xf32> -> vector<16x128xf32>
    %4 = vector.broadcast %2 : vector<1x128xf32> to vector<16x128xf32>
    %5 = arith.addf %3, %4 : vector<16x128xf32>
    %c0_5 = arith.constant 0 : index
    %c0_6 = arith.constant 0 : index
    %6 = vector.load %arg4[%c0_5, %c0_6] : memref<16x128xf32, #tpu.memory_space<vmem>>, vector<16x128xf32>
    tpu.vector_store %arg4[%c0_5, %c0_6], %5 {strides = array<i32>} : memref<16x128xf32, #tpu.memory_space<vmem>>, vector<16x128xf32>,
    %7 = tpu.iota {dimensions = array<i32: 1>} : vector<16x128xi32>
    %cst_7 = arith.constant dense<0xFF800000> : vector<16xf32>
    %8 = vector.multi_reduction <maximumf>, %5, %cst_7 [1] : vector<16x128xf32> to vector<16xf32>
    %9 = vector.shape_cast %8 : vector<16xf32> to vector<16x1xf32>
    %10 = vector.broadcast %9 : vector<16x1xf32> to vector<16x128xf32>
    %11 = arith.cmpf oeq, %5, %10 : vector<16x128xf32>
    %c128_i32 = arith.constant 128 : i32
    %12 = vector.broadcast %c128_i32 : i32 to vector<16x128xi32>
    %13 = arith.select %11, %7, %12 : vector<16x128xi1>, vector<16x128xi32>
    %cst_8 = arith.constant dense<2147483647> : vector<16xi32>
    %14 = vector.multi_reduction <minsi>, %13, %cst_8 [1] : vector<16x128xi32> to vector<16xi32>
    %15 = vector.shape_cast %14 : vector<16xi32> to vector<16x1xi32>
    %16 = vector.broadcast %15 : vector<16x1xi32> to vector<16x128xi32>
    %17 = arith.cmpi eq, %7, %16 : vector<16x128xi32>
    %cst_9 = arith.constant 0xFF800000 : f32
    %18 = vector.broadcast %cst_9 : f32 to vector<16x128xf32>
    %19 = arith.select %17, %18, %5 : vector<16x128xi1>, vector<16x128xf32>
    %cst_10 = arith.constant dense<0xFF800000> : vector<16xf32>
    %20 = vector.multi_reduction <maximumf>, %19, %cst_10 [1] : vector<16x128xf32> to vector<16xf32>
    %21 = vector.shape_cast %20 : vector<16xf32> to vector<16x1xf32>
    %22 = vector.broadcast %21 : vector<16x1xf32> to vector<16x128xf32>
    %23 = arith.cmpf oeq, %19, %22 : vector<16x128xf32>
    %c128_i32_11 = arith.constant 128 : i32
    %24 = vector.broadcast %c128_i32_11 : i32 to vector<16x128xi32>
    %25 = arith.select %23, %7, %24 : vector<16x128xi1>, vector<16x128xi32>
    %cst_12 = arith.constant dense<2147483647> : vector<16xi32>
    %26 = vector.multi_reduction <minsi>, %25, %cst_12 [1] : vector<16x128xi32> to vector<16xi32>
    %27 = vector.shape_cast %26 : vector<16xi32> to vector<16x1xi32>
    %28 = arith.subf %9, %9 : vector<16x1xf32>
    %29 = math.exp %28 : vector<16x1xf32>
    %30 = arith.subf %21, %9 : vector<16x1xf32>
    %31 = math.exp %30 : vector<16x1xf32>
    %32 = arith.addf %29, %31 : vector<16x1xf32>
    %33 = arith.divf %29, %32 : vector<16x1xf32>
    %34 = arith.divf %31, %32 : vector<16x1xf32>
    %35 = tpu.iota {dimensions = array<i32: 1>} : vector<16x128xi32>
    %c0_i32 = arith.constant 0 : i32
    %36 = vector.broadcast %c0_i32 : i32 to vector<16x128xi32>
    %37 = tpu.bitcast %33 : vector<16x1xf32> -> vector<16x1xi32>
    %c0_i32_13 = arith.constant 0 : i32
    %38 = vector.broadcast %c0_i32_13 : i32 to vector<16x128xi32>
    %39 = arith.cmpi eq, %35, %38 : vector<16x128xi32>
    %40 = vector.shape_cast %37 : vector<16x1xi32> to vector<16x1xi32>
    %41 = vector.broadcast %40 : vector<16x1xi32> to vector<16x128xi32>
    %42 = arith.select %39, %41, %36 : vector<16x128xi1>, vector<16x128xi32>
    %c2_i32 = arith.constant 2 : i32
    %43 = vector.broadcast %c2_i32 : i32 to vector<16x128xi32>
    %44 = arith.cmpi eq, %35, %43 : vector<16x128xi32>
    %45 = vector.shape_cast %15 : vector<16x1xi32> to vector<16x1xi32>
    %46 = vector.broadcast %45 : vector<16x1xi32> to vector<16x128xi32>
    %47 = arith.select %44, %46, %42 : vector<16x128xi1>, vector<16x128xi32>
    %48 = tpu.bitcast %34 : vector<16x1xf32> -> vector<16x1xi32>
    %c1_i32 = arith.constant 1 : i32
    %49 = vector.broadcast %c1_i32 : i32 to vector<16x128xi32>
    %50 = arith.cmpi eq, %35, %49 : vector<16x128xi32>
    %51 = vector.shape_cast %48 : vector<16x1xi32> to vector<16x1xi32>
    %52 = vector.broadcast %51 : vector<16x1xi32> to vector<16x128xi32>
    %53 = arith.select %50, %52, %47 : vector<16x128xi1>, vector<16x128xi32>
    %c3_i32 = arith.constant 3 : i32
    %54 = vector.broadcast %c3_i32 : i32 to vector<16x128xi32>
    %55 = arith.cmpi eq, %35, %54 : vector<16x128xi32>
    %56 = vector.shape_cast %27 : vector<16x1xi32> to vector<16x1xi32>
    %57 = vector.broadcast %56 : vector<16x1xi32> to vector<16x128xi32>
    %58 = arith.select %55, %57, %53 : vector<16x128xi1>, vector<16x128xi32>
    %c0_14 = arith.constant 0 : index
    %c0_15 = arith.constant 0 : index
    %59 = vector.load %arg5[%c0_14, %c0_15] : memref<16x128xi32, #tpu.memory_space<vmem>>, vector<16x128xi32>
    tpu.vector_store %arg5[%c0_14, %c0_15], %58 {strides = array<i32>} : memref<16x128xi32, #tpu.memory_space<vmem>>, vector<16x128xi32>,
    return
  }
  func.func @transform_0(%arg0: i32) -> (i32, i32) {
    %c0_i32 = arith.constant 0 : i32
    %c0_i32_0 = arith.constant 0 : i32
    return %arg0, %c0_i32 : i32, i32
  }
  func.func @transform_1(%arg0: i32) -> (i32, i32) {
    %c0_i32 = arith.constant 0 : i32
    %c0_i32_0 = arith.constant 0 : i32
    %c0_i32_1 = arith.constant 0 : i32
    return %c0_i32, %c0_i32_0 : i32, i32
  }
  func.func @transform_2(%arg0: i32) -> (i32, i32) {
    %c0_i32 = arith.constant 0 : i32
    %c0_i32_0 = arith.constant 0 : i32
    %c0_i32_1 = arith.constant 0 : i32
    return %c0_i32, %c0_i32_0 : i32, i32
  }
  func.func @transform_3(%arg0: i32) -> (i32, i32) {
    %c0_i32 = arith.constant 0 : i32
    %c0_i32_0 = arith.constant 0 : i32
    return %arg0, %c0_i32 : i32, i32
  }
  func.func @transform_4(%arg0: i32) -> (i32, i32) {
    %c0_i32 = arith.constant 0 : i32
    %c0_i32_0 = arith.constant 0 : i32
    return %arg0, %c0_i32 : i32, i32
  }
}

</mosaic_0001>

<bundles_post_ra>
// kernel: tpu_custom_call.1
= control target key start
LH: loop header
LB: loop body
LE: loop exit
PB: predicated region body
PF: predicated region fallthrough
CT: control target
= control target key end

     0   :  { %10 = vsyncpa [#allocation3], 0  ;;  %s565_s0 = inlined_call_operand.hbm [shape: f32[16,32], index: 0, kind: input, shape index: {}]   ;;  %s566_s1 = inlined_call_operand.hbm [shape: f32[32,128], index: 1, kind: input, shape index: {}]   ;;  %s567_s2 = inlined_call_operand.vmem [shape: f32[1,128], index: 2, kind: input, shape index: {}]   ;;  %s568_s3 = inlined_call_operand.hbm [shape: f32[16,128], index: 3, kind: output, shape index: {0}]   ;;  %s569_s4 = inlined_call_operand.hbm [shape: s32[16,128], index: 4, kind: output, shape index: {1}]  }
   0x1   :  { %11 = vsyncpa [#allocation6], 0 }
   0x2   :  { %12 = vsyncpa [#allocation4], 0 }
   0x3   :  { %13 = vsyncpa [#allocation9], 0  ;;  %s435_s15 = smov [#allocation2]   ;;  %s339_s19 = scalar_lea.hbm %s565_s0, 256 }
   0x4   :  { %s19_s16 = sshll.u32 %s435_s15, 4  ;;  %p340_p0 = scmp.ne.s32.totalorder %s565_s0, %s339_s19  ;;  %s20_s16 = int_to_ptr.vmem [resolvable:$true] %s19_s16 }
   0x5   :  { %p343_p1 = scmp.lt.u32.totalorder %s339_s19, %s565_s0 }
   0x7   :  { %p345_p2 = pnand %p343_p1, %p340_p0 }
   0x9   :  { %348 = shalt.err (!%p345_p2)
}
   0xa   :  { %s349_s24 = scalar_lea.vmem %s20_s16, 256  ;;  %p354_p4 = scmp.lt.s32.totalorder %s20_s16, %s20_s16 }
   0xb   :  { %p350_p3 = scmp.ne.s32.totalorder %s20_s16, %s349_s24  ;;  %p355_p5 = scmp.lt.s32.totalorder %s349_s24, %s349_s24 }
   0xd   :  { %p356_p6 = por %p355_p5, %p354_p4 }
   0xf   :  { %p357_p7 = pnand %p356_p6, %p350_p3 }
  0x11   :  { %360 = shalt.err (!%p357_p7)
}
  0x12   :  { %s436_s25 = smov 128   ;;  %s437_s26 = smov 8  }
  0x13   :  { %25 = dma.hbm_to_vmem [thread:$0]  %s565_s0, 256, %s20_s16, [#allocation3], %s436_s25, %s436_s25, %s437_s26  }
  0x14   :  { %s438_s29 = smov [#allocation5]   ;;  %s361_s7 = scalar_lea.hbm %s566_s1, 512 }
  0x15   :  { %s31_s30 = sshll.u32 %s438_s29, 4  ;;  %p362_p8 = scmp.ne.s32.totalorder %s566_s1, %s361_s7  ;;  %s32_s30 = int_to_ptr.vmem [resolvable:$true] %s31_s30 }
  0x16   :  { %p365_p9 = scmp.lt.u32.totalorder %s361_s7, %s566_s1 }
  0x18   :  { %p367_p10 = pnand %p365_p9, %p362_p8 }
  0x1a   :  { %370 = shalt.err (!%p367_p10)
}
  0x1b   :  { %s371_s12 = scalar_lea.vmem %s32_s30, 512  ;;  %p376_p12 = scmp.lt.s32.totalorder %s32_s30, %s32_s30 }
  0x1c   :  { %p372_p11 = scmp.ne.s32.totalorder %s32_s30, %s371_s12  ;;  %p377_p13 = scmp.lt.s32.totalorder %s371_s12, %s371_s12 }
  0x1e   :  { %p378_p0 = por %p377_p13, %p376_p12 }
  0x20   :  { %p379_p1 = pnand %p378_p0, %p372_p11 }
  0x22   :  { %382 = shalt.err (!%p379_p1)
}
  0x23   :  { %37 = dma.hbm_to_vmem [thread:$0]  %s566_s1, 512, %s32_s30, [#allocation6], %s436_s25, %s436_s25, %s437_s26  }
  0x24   :  { %427 = dma.done.wait [#allocation3], 256  }
  0x25   :  { %428 = vsyncadd [#allocation3], 4294967040 }
  0x26   :  { %429 = dma.done.wait [#allocation6], 512  }
  0x27   :  { %430 = vsyncadd [#allocation6], 4294966784  ;;  %vm59_vm0 = vcmask 261120   ;;  %v48_v0 = vld [vmem:[#allocation5] sm:$0xff]  ;;  %v49_v1 = vld [vmem:[#allocation5 + $0x8] sm:$0xff]  ;;  %v143_v13 = vlaneseq }
  0x28   :  { %v50_v2 = vld [vmem:[#allocation5 + $0x10] sm:$0xff]  ;;  %v313_v3 = vpack.c.bf16 %v49_v1, %v48_v0  ;;  %v51_v4 = vld [vmem:[#allocation5 + $0x18] sm:$0xff] }
  0x29   :  { %v46_v5 = vld [vmem:[#allocation2] sm:$0xff]  ;;  %v317_v6 = vpack.c.bf16 %v51_v4, %v50_v2  ;;  %v47_v7 = vld [vmem:[#allocation2 + $0x8] sm:$0xff]  ;;  %v499_v14 = vand.u32 127, %v143_v13 }
  0x2a   :  { %310 = vmatprep.mubr.msk.f32.mxu0 %vm59_vm0, %v46_v5  ;;  %314 = vmatprep.subr.bf16.mxu0 %v313_v3  ;;  %v293_v8 = vld [vmem:[%s567_s2] ss:$0 sm:$0xff]  ;;  %s439_s2 = smov [#allocation7]  }
  0x2b   :  { %316 = vmatpush3.bf16.msra.mxu0 %v313_v3  ;;  %s264_s15 = sshll.u32 %s439_s2, 4  ;;  %s265_s15 = int_to_ptr.vmem [resolvable:$true] %s264_s15 }
  0x2c   :  { %318 = vmatprep.subr.bf16.mxu0 %v317_v6  ;;  %s383_s16 = scalar_lea.vmem %s265_s15, 256  ;;  %p388_p3 = scmp.lt.s32.totalorder %s265_s15, %s265_s15 }
  0x2d   :  { %p384_p2 = scmp.ne.s32.totalorder %s265_s15, %s383_s16  ;;  %p389_p4 = scmp.lt.s32.totalorder %s383_s16, %s383_s16 }
  0x2f   :  { %320 = vmatpush3.bf16.msra.mxu0 %v317_v6  ;;  %p390_p5 = por %p389_p4, %p388_p3 }
  0x31   :  { %p391_p6 = pnand %p390_p5, %p384_p2 }
  0x32   :  { %311 = vmatmul.mubr.msk.f32.vlgmr.msra.gmra.mrb[0].mxu0 %vm59_vm0, %v47_v7 }
 0x105   :  { %v312_v9 = vpop.f32.mrb[0].mxu0 }
 0x106   :  { %v138_v10 = vadd.f32 %v312_v9, %v293_v8  ;;  %v132_v11 = vpop.f32.mrb[1].mxu0 }
 0x107   :  { %v133_v12 = vadd.f32 %v293_v8, %v132_v11 }
 0x108   :  { %142 = vst [vmem:[#allocation7 + $0x8] sm:$0xff] %v138_v10 }
 0x109   :  { %141 = vst [vmem:[#allocation7] sm:$0xff] %v133_v12  ;;  %145 = vmax.xlane.f32.xlu0 %v133_v12 }
 0x10d   :  { %147 = vmax.xlane.f32.xlu0 %v138_v10 }
 0x196   :  { %v501_v15 = vpop.xlane.xlu0 %145 }
 0x197   :  { %vm149_vm1 = vcmp.eq.f32.partialorder %v133_v12, %v501_v15 }
 0x198   :  { %v151_v16 = vsel %vm149_vm1, %v499_v14, 128 }
 0x199   :  { %v154_v17 = vshra.s32 %v151_v16, 16  ;;  %v153_v23 = vand.u32 65535, %v151_v16 }
 0x19a   :  { %v505_v18 = vpop.xlane.xlu0 %147 }
 0x19b   :  { %vm150_vm2 = vcmp.eq.f32.partialorder %v138_v10, %v505_v18  ;;  %v156_v19 = vcvt.s32.f32 %v154_v17  ;;  %v155_v25 = vcvt.s32.f32 %v153_v23 }
 0x19c   :  { %v152_v20 = vsel %vm150_vm2, %v499_v14, 128 }
 0x19d   :  { %157 = vmin.xlane.f32.xlu1 %v156_v19  ;;  %v168_v21 = vshra.s32 %v152_v20, 16  ;;  %v167_v26 = vand.u32 65535, %v152_v20 }
 0x19f   :  { %v170_v22 = vcvt.s32.f32 %v168_v21  ;;  %v169_v29 = vcvt.s32.f32 %v167_v26 }
 0x1a1   :  { %171 = vmin.xlane.f32.xlu1 %v170_v22 }
 0x22a   :  { %v158_v24 = vpop.xlane.xlu1 %157 }
 0x22b   :  { %vm159_vm3 = vcmp.eq.f32.partialorder %v156_v19, %v158_v24  ;;  %v164_v31 = vcvt.f32.s32 %v158_v24 }
 0x22c   :  { %v160_v27 = vsel %vm159_vm3, %v155_v25, inf }
 0x22d   :  { %161 = vmin.xlane.f32.xlu0 %v160_v27  ;;  %v165_v33 = vshll.u32 %v164_v31, 16 }
 0x22e   :  { %v172_v28 = vpop.xlane.xlu1 %171 }
 0x22f   :  { %vm173_vm4 = vcmp.eq.f32.partialorder %v170_v22, %v172_v28  ;;  %v178_v34 = vcvt.f32.s32 %v172_v28 }
 0x230   :  { %v174_v30 = vsel %vm173_vm4, %v169_v29, inf }
 0x231   :  { %175 = vmin.xlane.f32.xlu1 %v174_v30  ;;  %v179_v38 = vshll.u32 %v178_v34, 16 }
 0x2ba   :  { %v162_v32 = vpop.xlane.xlu0 %161 }
 0x2bb   :  { %v163_v35 = vcvt.f32.s32 %v162_v32 }
 0x2bd   :  { %v509_v36 = vadd.s32 %v165_v33, %v163_v35 }
 0x2be   :  { %v176_v37 = vpop.xlane.xlu1 %175 }
 0x2bf   :  { %v177_v39 = vcvt.f32.s32 %v176_v37  ;;  %vm181_vm5 = vcmp.eq.s32.totalorder %v499_v14, %v509_v36 }
 0x2c0   :  { %v183_v40 = vsel %vm181_vm5, -inf, %v133_v12 }
 0x2c1   :  { %v513_v41 = vadd.s32 %v179_v38, %v177_v39  ;;  %185 = vmax.xlane.f32.xlu0 %v183_v40 }
 0x2c3   :  { %vm182_vm6 = vcmp.eq.s32.totalorder %v499_v14, %v513_v41 }
 0x2c4   :  { %v184_v42 = vsel %vm182_vm6, -inf, %v138_v10 }
 0x2c5   :  { %187 = vmax.xlane.f32.xlu1 %v184_v42 }
 0x34e   :  { %v186_v43 = vpop.xlane.xlu0 %185 }
 0x34f   :  { %vm189_vm7 = vcmp.eq.f32.partialorder %v183_v40, %v186_v43 }
 0x350   :  { %v191_v44 = vsel %vm189_vm7, %v499_v14, 128 }
 0x351   :  { %v194_v45 = vshra.s32 %v191_v44, 16  ;;  %v193_v51 = vand.u32 65535, %v191_v44 }
 0x352   :  { %v188_v46 = vpop.xlane.xlu1 %187 }
 0x353   :  { %vm190_vm8 = vcmp.eq.f32.partialorder %v184_v42, %v188_v46  ;;  %v196_v47 = vcvt.s32.f32 %v194_v45  ;;  %v195_v53 = vcvt.s32.f32 %v193_v51 }
 0x354   :  { %v192_v48 = vsel %vm190_vm8, %v499_v14, 128 }
 0x355   :  { %197 = vmin.xlane.f32.xlu0 %v196_v47  ;;  %v208_v49 = vshra.s32 %v192_v48, 16  ;;  %v207_v54 = vand.u32 65535, %v192_v48 }
 0x357   :  { %v210_v50 = vcvt.s32.f32 %v208_v49  ;;  %v209_v57 = vcvt.s32.f32 %v207_v54 }
 0x359   :  { %211 = vmin.xlane.f32.xlu1 %v210_v50 }
 0x3e2   :  { %v198_v52 = vpop.xlane.xlu0 %197 }
 0x3e3   :  { %vm199_vm9 = vcmp.eq.f32.partialorder %v196_v47, %v198_v52 }
 0x3e4   :  { %v200_v55 = vsel %vm199_vm9, %v195_v53, inf }
 0x3e5   :  { %201 = vmin.xlane.f32.xlu0 %v200_v55 }
 0x3e6   :  { %v212_v56 = vpop.xlane.xlu1 %211 }
 0x3e7   :  { %vm213_vm10 = vcmp.eq.f32.partialorder %v210_v50, %v212_v56 }
 0x3e8   :  { %v214_v58 = vsel %vm213_vm10, %v209_v57, inf }
 0x3e9   :  { %215 = vmin.xlane.f32.xlu1 %v214_v58 }
 0x3ea   :  { %394 = shalt.err (!%p391_p6)
}
 0x3eb   :  { %s395_s19 = scalar_lea.hbm %s568_s3, 256 }
 0x3ec   :  { %p396_p7 = scmp.ne.s32.totalorder %s568_s3, %s395_s19  ;;  %p399_p8 = scmp.lt.u32.totalorder %s395_s19, %s568_s3 }
 0x3ee   :  { %p401_p9 = pnand %p399_p8, %p396_p7 }
 0x3f0   :  { %404 = shalt.err (!%p401_p9)
}
 0x3f1   :  { %270 = dma.vmem_to_hbm [thread:$0]  %s265_s15, 256, %s568_s3, [#allocation4], %s436_s25, %s436_s25, %s437_s26   ;;  %v227_v59 = vsub.f32 %v186_v43, %v501_v15  ;;  %v221_v60 = vsub.f32 %v501_v15, %v501_v15  ;;  %v228_v62 = vsub.f32 %v188_v46, %v505_v18  ;;  %v222_v0 = vsub.f32 %v505_v18, %v505_v18 }
 0x3f2   :  { %vm243_vm11 = vcmp.eq.s32.totalorder %v499_v14, 0  ;;  %v204_v12 = vcvt.f32.s32 %v198_v52  ;;  %vm246_vm12 = vcmp.eq.s32.totalorder %v499_v14, 2  ;;  %vm251_vm13 = vcmp.eq.s32.totalorder %v499_v14, 1  ;;  %s440_s3 = smov [#allocation8]  }
 0x3f3   :  { %v229_v61 = vmul.f32 1.442695, %v227_v59  ;;  %v223_v63 = vmul.f32 1.442695, %v221_v60  ;;  %v231_v1 = vmul.f32 1.442695, %v228_v62  ;;  %v218_v18 = vcvt.f32.s32 %v212_v56 }
 0x3f4   :  { %v225_v2 = vmul.f32 1.442695, %v222_v0  ;;  %v205_v17 = vshll.u32 %v204_v12, 16  ;;  %vm254_vm14 = vcmp.eq.s32.totalorder %v499_v14, 3  ;;  %s276_s28 = sshll.u32 %s440_s3, 4  ;;  %s277_s28 = int_to_ptr.vmem [resolvable:$true] %s276_s28 }
 0x3f5   :  { %327 = vpow2.f32 %v229_v61  ;;  %v219_v26 = vshll.u32 %v218_v18, 16  ;;  %s405_s29 = scalar_lea.vmem %s277_s28, 256  ;;  %p410_p11 = scmp.lt.s32.totalorder %s277_s28, %s277_s28 }
 0x3f6   :  { %329 = vpow2.f32 %v223_v63  ;;  %p406_p10 = scmp.ne.s32.totalorder %s277_s28, %s405_s29  ;;  %p411_p12 = scmp.lt.s32.totalorder %s405_s29, %s405_s29 }
 0x3f7   :  { %331 = vpow2.f32 %v231_v1 }
 0x3f8   :  { %333 = vpow2.f32 %v225_v2  ;;  %p412_p13 = por %p411_p12, %p410_p11 }
 0x3fa   :  { %p413_p0 = pnand %p412_p13, %p406_p10 }
 0x3ff   :  { %v328_v3 = vpop.eup %327 }
 0x400   :  { %v330_v4 = vpop.eup %329 }
 0x401   :  { %v233_v5 = vadd.f32 %v330_v4, %v328_v3  ;;  %v332_v6 = vpop.eup %331 }
 0x402   :  { %v334_v7 = vpop.eup %333 }
 0x403   :  { %335 = vrcp.f32 %v233_v5  ;;  %v234_v8 = vadd.f32 %v334_v7, %v332_v6 }
 0x405   :  { %337 = vrcp.f32 %v234_v8 }
 0x40d   :  { %v336_v9 = vpop.eup %335 }
 0x40e   :  { %v236_v10 = vmul.f32 %v336_v9, %v330_v4  ;;  %v239_v21 = vmul.f32 %v336_v9, %v328_v3 }
 0x40f   :  { %v338_v11 = vpop.eup %337 }
 0x410   :  { %v238_v13 = vmul.f32 %v338_v11, %v334_v7  ;;  %v244_v15 = vsel %vm243_vm11, %v236_v10, 0  ;;  %v240_v30 = vmul.f32 %v338_v11, %v332_v6 }
 0x411   :  { %v247_v20 = vsel %vm246_vm12, %v509_v36, %v244_v15 }
 0x412   :  { %v245_v22 = vsel %vm243_vm11, %v238_v13, 0  ;;  %v252_v25 = vsel %vm251_vm13, %v239_v21, %v247_v20 }
 0x413   :  { %v248_v28 = vsel %vm246_vm12, %v513_v41, %v245_v22 }
 0x414   :  { %v253_v32 = vsel %vm251_vm13, %v240_v30, %v248_v28 }
 0x472   :  { %v202_v16 = vpop.xlane.xlu0 %201 }
 0x473   :  { %v203_v19 = vcvt.f32.s32 %v202_v16 }
 0x475   :  { %v206_v23 = vadd.s32 %v205_v17, %v203_v19 }
 0x476   :  { %v216_v24 = vpop.xlane.xlu1 %215 }
 0x477   :  { %v217_v27 = vcvt.f32.s32 %v216_v24  ;;  %v255_v29 = vsel %vm254_vm14, %v206_v23, %v252_v25 }
 0x478   :  { %257 = vst [vmem:[#allocation8] sm:$0xff] %v255_v29 }
 0x479   :  { %v220_v31 = vadd.s32 %v219_v26, %v217_v27 }
 0x47b   :  { %v256_v33 = vsel %vm254_vm14, %v220_v31, %v253_v32 }
 0x47c   :  { %258 = vst [vmem:[#allocation8 + $0x8] sm:$0xff] %v256_v33 }
 0x47d   :  { %416 = shalt.err (!%p413_p0)
}
 0x47e   :  { %s417_s6 = scalar_lea.hbm %s569_s4, 256 }
 0x47f   :  { %p418_p1 = scmp.ne.s32.totalorder %s569_s4, %s417_s6  ;;  %p421_p2 = scmp.lt.u32.totalorder %s417_s6, %s569_s4 }
 0x481   :  { %p423_p3 = pnand %p421_p2, %p418_p1 }
 0x483   :  { %426 = shalt.err (!%p423_p3)
}
 0x484   :  { %282 = dma.vmem_to_hbm [thread:$0]  %s277_s28, 256, %s569_s4, [#allocation9], %s436_s25, %s436_s25, %s437_s26  }
 0x485   :  { %431 = dma.done.wait [#allocation4], 256  }
 0x486   :  { %432 = vsyncadd [#allocation4], 4294967040 }
 0x487   :  { %433 = dma.done.wait [#allocation9], 256  }
 0x488   :  { %434 = vsyncadd [#allocation9], 4294967040 }
 0x489   :  { %289 = vsyncpa [#allocation3], 1 }
 0x48a   :  { %290 = vsyncpa [#allocation6], 1 }
 0x48b   :  { %291 = vsyncpa [#allocation4], 1 }
 0x48c   :  { %292 = vsyncpa [#allocation9], 1 }

</bundles_post_ra>
